<compile_context>
chip_gen: v7x
topology: tpu7x:2x2x1
jax: 0.10.0
libtpu: 0.0.40
codegen_flags: <defaults>
</compile_context>

<pallas_src>
import jax
import jax.numpy as jnp
from jax.experimental import pallas as pl
from jax.experimental.pallas import tpu as pltpu

_LANE = 128
_SUBLANE = 8


def _round_up(x, m):
    return ((x + m - 1) // m) * m


def _pad2d(x, rows, cols):
    return jnp.pad(x, ((0, rows - x.shape[0]), (0, cols - x.shape[1])))


def _make_actor_kernel(scale, max_action):
    """Build the fused MLP kernel.

    Ref layout: (state, action, W1s, W1a, b1, [W_i, b_i]*, W_out, b_out, out).
    All feature dims are pre-padded to multiples of 128; padded columns of the
    weights/biases are zero so they contribute exact zeros downstream.
    """

    def kernel(*refs):
        s_ref, a_ref = refs[0], refs[1]
        out_ref = refs[-1]
        wr = refs[2:-1]

        # First hidden layer: concat folded into two MXU dots.
        h = (jnp.dot(s_ref[...], wr[0][...], preferred_element_type=jnp.float32)
             + jnp.dot(a_ref[...], wr[1][...], preferred_element_type=jnp.float32)
             + wr[2][...])
        h = jnp.maximum(h, 0.0)

        # Remaining hidden layers: linear + relu.
        idx = 3
        while idx < len(wr) - 2:
            h = jnp.dot(h, wr[idx][...],
                        preferred_element_type=jnp.float32) + wr[idx + 1][...]
            h = jnp.maximum(h, 0.0)
            idx += 2

        # Action head: linear + tanh (EUP), then perturb + clamp (VPU).
        a = jnp.tanh(jnp.dot(h, wr[-2][...],
                             preferred_element_type=jnp.float32) + wr[-1][...])
        out = scale * a + a_ref[...]
        out_ref[...] = jnp.clip(out, -max_action, max_action)

    return kernel


def actor_forward(state, action, params, *, phi, max_action, block_b=256):
    """Actor forward.  params = [w1, b1, w2, b2, ..., w_out, b_out] with
    weights stored as (in_features, out_features)."""
    state = state.astype(jnp.float32)
    action = action.astype(jnp.float32)
    B, S = state.shape
    A = action.shape[1]

    S_pad = _round_up(S, _LANE)
    A_pad = _round_up(A, _LANE)
    TB = min(block_b, _round_up(B, _SUBLANE))   # batch tile (multiple of 8)
    B_pad = _round_up(B, TB)

    # --- Prepare padded, VMEM-resident weights -------------------------------
    # Split W1 so concat([state, action]) never materializes:
    #   concat(s, a) @ W1 == s @ W1[:S] + a @ W1[S:]
    w1, b1 = params[0], params[1]
    h1 = w1.shape[1]
    H1_pad = _round_up(h1, _LANE)
    w_list = [
        _pad2d(w1[:S].astype(jnp.float32), S_pad, H1_pad),
        _pad2d(w1[S:].astype(jnp.float32), A_pad, H1_pad),
        _pad2d(b1.reshape(1, -1).astype(jnp.float32), 1, H1_pad),
    ]
    prev_pad = H1_pad
    for li in range(2, len(params), 2):
        w, b = params[li], params[li + 1]
        out_pad = _round_up(w.shape[1], _LANE)
        w_list.append(_pad2d(w.astype(jnp.float32), prev_pad, out_pad))
        w_list.append(_pad2d(b.reshape(1, -1).astype(jnp.float32), 1, out_pad))
        prev_pad = out_pad
    assert prev_pad == A_pad, "action head width mismatch"

    # --- Padded activations ---------------------------------------------------
    state_p = _pad2d(state, B_pad, S_pad)
    action_p = _pad2d(action, B_pad, A_pad)

    # --- BlockSpecs -----------------------------------------------------------
    def resident(arr):
        nd = arr.ndim
        return pl.BlockSpec(arr.shape, lambda i, _nd=nd: (0,) * _nd)

    in_specs = [
        pl.BlockSpec((TB, S_pad), lambda i: (i, 0)),
        pl.BlockSpec((TB, A_pad), lambda i: (i, 0)),
    ] + [resident(w) for w in w_list]
    out_spec = pl.BlockSpec((TB, A_pad), lambda i: (i, 0))

    # --- Cost estimate (advisory) --------------------------------------------
    flops = int(sum(2 * B_pad * w.shape[0] * w.shape[1]
                    for w in w_list if w.shape[0] > 1))
    bytes_accessed = int(4 * (state_p.size + action_p.size
                              + sum(int(w.size) for w in w_list)
                              + B_pad * A_pad))

    kernel = _make_actor_kernel(float(phi) * float(max_action), float(max_action))

    out = pl.pallas_call(
        kernel,
        out_shape=jax.ShapeDtypeStruct((B_pad, A_pad), jnp.float32),
        grid=(B_pad // TB,),
        in_specs=in_specs,
        out_specs=out_spec,
        compiler_params=pltpu.CompilerParams(
            dimension_semantics=("parallel",)),
        cost_estimate=pl.CostEstimate(
            flops=flops,
            transcendentals=int(B_pad * A_pad),
            bytes_accessed=bytes_accessed),
    )(state_p, action_p, *w_list)

    return out[:B, :A]


def init_actor_params(key, state_dim, action_dim, hidden_dims):
    """Deterministic synthetic init (shapes match the module's nn.Linear layers,
    stored transposed as (in_features, out_features))."""
    dims = [state_dim + action_dim] + list(hidden_dims) + [action_dim]
    params = []
    for i in range(len(dims) - 1):
        key, kw, kb = jax.random.split(key, 3)
        bound = 1.0 / jnp.sqrt(dims[i])
        w = jax.random.uniform(kw, (dims[i], dims[i + 1]), jnp.float32, -bound, bound)
        b = jax.random.uniform(kb, (1, dims[i + 1]), jnp.float32, -bound, bound)
        params += [w, b]
    return params


if __name__ == "__main__":
    # Small shapes consistent with the module's forward.
    batch = 8
    state_dim = 24
    action_dim = 8
    hidden_dims = (32, 32)      # hidden_layers_dict -> two linear+relu layers
    phi = 0.05
    max_action = 1.0

    key = jax.random.PRNGKey(0)
    k_state, k_action, k_params = jax.random.split(key, 3)

    state = jax.random.normal(k_state, (batch, state_dim), jnp.float32)
    action = jax.random.uniform(k_action, (batch, action_dim), jnp.float32,
                                -max_action, max_action)
    params = init_actor_params(k_params, state_dim, action_dim, hidden_dims)

    out = actor_forward(state, action, params, phi=phi, max_action=max_action)
    jax.block_until_ready(out)

    # Pure-JAX reference check of the fused kernel.
    w1, b1, w2, b2, w3, b3 = params
    sa = jnp.concatenate([state, action], axis=1)
    h = jnp.maximum(sa @ w1 + b1, 0.0)
    h = jnp.maximum(h @ w2 + b2, 0.0)
    a = jnp.tanh(h @ w3 + b3)
    ref = jnp.clip(phi * max_action * a + action, -max_action, max_action)

    assert out.shape == (batch, action_dim)
    assert jnp.allclose(out, ref, atol=1e-5), "mismatch vs reference"

    print("KERNEL_OK")
</pallas_src>

<mosaic_0001>
module attributes {stable_mosaic.version = 11 : i64} {
  func.func @kernel(%arg0: i32, %arg1: memref<8x128xf32, #tpu.memory_space<vmem>>, %arg2: memref<8x128xf32, #tpu.memory_space<vmem>>, %arg3: memref<128x128xf32, #tpu.memory_space<vmem>>, %arg4: memref<128x128xf32, #tpu.memory_space<vmem>>, %arg5: memref<1x128xf32, #tpu.memory_space<vmem>>, %arg6: memref<128x128xf32, #tpu.memory_space<vmem>>, %arg7: memref<1x128xf32, #tpu.memory_space<vmem>>, %arg8: memref<128x128xf32, #tpu.memory_space<vmem>>, %arg9: memref<1x128xf32, #tpu.memory_space<vmem>>, %arg10: memref<8x128xf32, #tpu.memory_space<vmem>>) attributes {dimension_semantics = [#tpu.dimension_semantics<parallel>], iteration_bounds = array<i64: 1>, scalar_prefetch = 0 : i64, scratch_operands = 0 : i64, tpu.core_type = #tpu.core_type<tc>, window_params = [{transform_indices = @transform_0, window_bounds = array<i64: 8, 128>}, {transform_indices = @transform_1, window_bounds = array<i64: 8, 128>}, {pipeline_mode = #tpu.pipeline_mode<synchronous>, transform_indices = @transform_2, window_bounds = array<i64: 128, 128>}, {pipeline_mode = #tpu.pipeline_mode<synchronous>, transform_indices = @transform_3, window_bounds = array<i64: 128, 128>}, {pipeline_mode = #tpu.pipeline_mode<synchronous>, transform_indices = @transform_4, window_bounds = array<i64: 1, 128>}, {pipeline_mode = #tpu.pipeline_mode<synchronous>, transform_indices = @transform_5, window_bounds = array<i64: 128, 128>}, {pipeline_mode = #tpu.pipeline_mode<synchronous>, transform_indices = @transform_6, window_bounds = array<i64: 1, 128>}, {pipeline_mode = #tpu.pipeline_mode<synchronous>, transform_indices = @transform_7, window_bounds = array<i64: 128, 128>}, {pipeline_mode = #tpu.pipeline_mode<synchronous>, transform_indices = @transform_8, window_bounds = array<i64: 1, 128>}, {transform_indices = @transform_9, window_bounds = array<i64: 8, 128>}]} {
    %c0 = arith.constant 0 : index
    %c0_0 = arith.constant 0 : index
    %0 = vector.load %arg1[%c0, %c0_0] : memref<8x128xf32, #tpu.memory_space<vmem>>, vector<8x128xf32>
    %c0_1 = arith.constant 0 : index
    %c0_2 = arith.constant 0 : index
    %1 = vector.load %arg3[%c0_1, %c0_2] : memref<128x128xf32, #tpu.memory_space<vmem>>, vector<128x128xf32>
    %cst = arith.constant dense<0.000000e+00> : vector<8x128xf32>
    %2 = tpu.matmul %0, %1, %cst {dimension_numbers = #tpu.dot_dimension_numbers<[1], [0], [0], [1], [0, 0, 1, 1], [], []>} : vector<8x128xf32>, vector<128x128xf32>, vector<8x128xf32> -> vector<8x128xf32>
    %c0_3 = arith.constant 0 : index
    %c0_4 = arith.constant 0 : index
    %3 = vector.load %arg2[%c0_3, %c0_4] : memref<8x128xf32, #tpu.memory_space<vmem>>, vector<8x128xf32>
    %c0_5 = arith.constant 0 : index
    %c0_6 = arith.constant 0 : index
    %4 = vector.load %arg4[%c0_5, %c0_6] : memref<128x128xf32, #tpu.memory_space<vmem>>, vector<128x128xf32>
    %cst_7 = arith.constant dense<0.000000e+00> : vector<8x128xf32>
    %5 = tpu.matmul %3, %4, %cst_7 {dimension_numbers = #tpu.dot_dimension_numbers<[1], [0], [0], [1], [0, 0, 1, 1], [], []>} : vector<8x128xf32>, vector<128x128xf32>, vector<8x128xf32> -> vector<8x128xf32>
    %6 = arith.addf %2, %5 : vector<8x128xf32>
    %c0_8 = arith.constant 0 : index
    %c0_9 = arith.constant 0 : index
    %7 = vector.load %arg5[%c0_8, %c0_9] : memref<1x128xf32, #tpu.memory_space<vmem>>, vector<1x128xf32>
    %8 = vector.broadcast %7 : vector<1x128xf32> to vector<8x128xf32>
    %9 = arith.addf %6, %8 : vector<8x128xf32>
    %cst_10 = arith.constant 0.000000e+00 : f32
    %10 = vector.broadcast %cst_10 : f32 to vector<8x128xf32>
    %11 = arith.maximumf %9, %10 : vector<8x128xf32>
    %c0_11 = arith.constant 0 : index
    %c0_12 = arith.constant 0 : index
    %12 = vector.load %arg6[%c0_11, %c0_12] : memref<128x128xf32, #tpu.memory_space<vmem>>, vector<128x128xf32>
    %cst_13 = arith.constant dense<0.000000e+00> : vector<8x128xf32>
    %13 = tpu.matmul %11, %12, %cst_13 {dimension_numbers = #tpu.dot_dimension_numbers<[1], [0], [0], [1], [0, 0, 1, 1], [], []>} : vector<8x128xf32>, vector<128x128xf32>, vector<8x128xf32> -> vector<8x128xf32>
    %c0_14 = arith.constant 0 : index
    %c0_15 = arith.constant 0 : index
    %14 = vector.load %arg7[%c0_14, %c0_15] : memref<1x128xf32, #tpu.memory_space<vmem>>, vector<1x128xf32>
    %15 = vector.broadcast %14 : vector<1x128xf32> to vector<8x128xf32>
    %16 = arith.addf %13, %15 : vector<8x128xf32>
    %cst_16 = arith.constant 0.000000e+00 : f32
    %17 = vector.broadcast %cst_16 : f32 to vector<8x128xf32>
    %18 = arith.maximumf %16, %17 : vector<8x128xf32>
    %c0_17 = arith.constant 0 : index
    %c0_18 = arith.constant 0 : index
    %19 = vector.load %arg8[%c0_17, %c0_18] : memref<128x128xf32, #tpu.memory_space<vmem>>, vector<128x128xf32>
    %cst_19 = arith.constant dense<0.000000e+00> : vector<8x128xf32>
    %20 = tpu.matmul %18, %19, %cst_19 {dimension_numbers = #tpu.dot_dimension_numbers<[1], [0], [0], [1], [0, 0, 1, 1], [], []>} : vector<8x128xf32>, vector<128x128xf32>, vector<8x128xf32> -> vector<8x128xf32>
    %c0_20 = arith.constant 0 : index
    %c0_21 = arith.constant 0 : index
    %21 = vector.load %arg9[%c0_20, %c0_21] : memref<1x128xf32, #tpu.memory_space<vmem>>, vector<1x128xf32>
    %22 = vector.broadcast %21 : vector<1x128xf32> to vector<8x128xf32>
    %23 = arith.addf %20, %22 : vector<8x128xf32>
    %24 = math.tanh %23 : vector<8x128xf32>
    %cst_22 = arith.constant 5.000000e-02 : f32
    %25 = vector.broadcast %cst_22 : f32 to vector<8x128xf32>
    %26 = arith.mulf %25, %24 : vector<8x128xf32>
    %c0_23 = arith.constant 0 : index
    %c0_24 = arith.constant 0 : index
    %27 = vector.load %arg2[%c0_23, %c0_24] : memref<8x128xf32, #tpu.memory_space<vmem>>, vector<8x128xf32>
    %28 = arith.addf %26, %27 : vector<8x128xf32>
    %cst_25 = arith.constant -1.000000e+00 : f32
    %cst_26 = arith.constant 1.000000e+00 : f32
    %29 = vector.broadcast %cst_25 : f32 to vector<8x128xf32>
    %30 = arith.maximumf %29, %28 : vector<8x128xf32>
    %31 = vector.broadcast %cst_26 : f32 to vector<8x128xf32>
    %32 = arith.minimumf %31, %30 : vector<8x128xf32>
    %c0_27 = arith.constant 0 : index
    %c0_28 = arith.constant 0 : index
    %33 = vector.load %arg10[%c0_27, %c0_28] : memref<8x128xf32, #tpu.memory_space<vmem>>, vector<8x128xf32>
    tpu.vector_store %arg10[%c0_27, %c0_28], %32 {strides = array<i32>} : memref<8x128xf32, #tpu.memory_space<vmem>>, vector<8x128xf32>,
    return
  }
  func.func @transform_0(%arg0: i32) -> (i32, i32) {
    %c0_i32 = arith.constant 0 : i32
    %c0_i32_0 = arith.constant 0 : i32
    return %arg0, %c0_i32 : i32, i32
  }
  func.func @transform_1(%arg0: i32) -> (i32, i32) {
    %c0_i32 = arith.constant 0 : i32
    %c0_i32_0 = arith.constant 0 : i32
    return %arg0, %c0_i32 : i32, i32
  }
  func.func @transform_2(%arg0: i32) -> (i32, i32) {
    %c0_i32 = arith.constant 0 : i32
    %c0_i32_0 = arith.constant 0 : i32
    %c0_i32_1 = arith.constant 0 : i32
    return %c0_i32, %c0_i32_0 : i32, i32
  }
  func.func @transform_3(%arg0: i32) -> (i32, i32) {
    %c0_i32 = arith.constant 0 : i32
    %c0_i32_0 = arith.constant 0 : i32
    %c0_i32_1 = arith.constant 0 : i32
    return %c0_i32, %c0_i32_0 : i32, i32
  }
  func.func @transform_4(%arg0: i32) -> (i32, i32) {
    %c0_i32 = arith.constant 0 : i32
    %c0_i32_0 = arith.constant 0 : i32
    %c0_i32_1 = arith.constant 0 : i32
    return %c0_i32, %c0_i32_0 : i32, i32
  }
  func.func @transform_5(%arg0: i32) -> (i32, i32) {
    %c0_i32 = arith.constant 0 : i32
    %c0_i32_0 = arith.constant 0 : i32
    %c0_i32_1 = arith.constant 0 : i32
    return %c0_i32, %c0_i32_0 : i32, i32
  }
  func.func @transform_6(%arg0: i32) -> (i32, i32) {
    %c0_i32 = arith.constant 0 : i32
    %c0_i32_0 = arith.constant 0 : i32
    %c0_i32_1 = arith.constant 0 : i32
    return %c0_i32, %c0_i32_0 : i32, i32
  }
  func.func @transform_7(%arg0: i32) -> (i32, i32) {
    %c0_i32 = arith.constant 0 : i32
    %c0_i32_0 = arith.constant 0 : i32
    %c0_i32_1 = arith.constant 0 : i32
    return %c0_i32, %c0_i32_0 : i32, i32
  }
  func.func @transform_8(%arg0: i32) -> (i32, i32) {
    %c0_i32 = arith.constant 0 : i32
    %c0_i32_0 = arith.constant 0 : i32
    %c0_i32_1 = arith.constant 0 : i32
    return %c0_i32, %c0_i32_0 : i32, i32
  }
  func.func @transform_9(%arg0: i32) -> (i32, i32) {
    %c0_i32 = arith.constant 0 : i32
    %c0_i32_0 = arith.constant 0 : i32
    return %arg0, %c0_i32 : i32, i32
  }
}

</mosaic_0001>

<bundles_post_ra>
// kernel: tpu_custom_call.1
= control target key start
LH: loop header
LB: loop body
LE: loop exit
PB: predicated region body
PF: predicated region fallthrough
CT: control target
= control target key end

     0   :  { %14 = vsyncpa [#allocation3], 0  ;;  %s1202_s0 = inlined_call_operand.hbm [shape: f32[8,128], index: 0, kind: input, shape index: {}]   ;;  %s1203_s1 = inlined_call_operand.hbm [shape: f32[8,128], index: 1, kind: input, shape index: {}]   ;;  %s1204_s2 = inlined_call_operand.hbm [shape: f32[128,128], index: 2, kind: input, shape index: {}]   ;;  %s1205_s3 = inlined_call_operand.hbm [shape: f32[128,128], index: 3, kind: input, shape index: {}]   ;;  %s1206_s4 = inlined_call_operand.vmem [shape: f32[1,128], index: 4, kind: input, shape index: {}]   ;;  %s1207_s5 = inlined_call_operand.hbm [shape: f32[128,128], index: 5, kind: input, shape index: {}]   ;;  %s1208_s6 = inlined_call_operand.vmem [shape: f32[1,128], index: 6, kind: input, shape index: {}]   ;;  %s1209_s7 = inlined_call_operand.hbm [shape: f32[128,128], index: 7, kind: input, shape index: {}]   ;;  %s1210_s8 = inlined_call_operand.vmem [shape: f32[1,128], index: 8, kind: input, shape index: {}]   ;;  %s1211_s9 = inlined_call_operand.hbm [shape: f32[8,128], index: 9, kind: output, shape index: {}]  }
   0x1   :  { %15 = vsyncpa [#allocation6], 0 }
   0x2   :  { %16 = vsyncpa [#allocation9], 0 }
   0x3   :  { %17 = vsyncpa [#allocation12], 0 }
   0x4   :  { %18 = vsyncpa [#allocation4], 0  ;;  %s991_s30 = smov [#allocation5]   ;;  %s827_s13 = scalar_lea.hbm %s1203_s1, 128 }
   0x5   :  { %s35_s10 = sshll.u32 %s991_s30, 4  ;;  %p828_p0 = scmp.ne.s32.totalorder %s1203_s1, %s827_s13  ;;  %s36_s10 = int_to_ptr.vmem [resolvable:$true] %s35_s10 }
   0x6   :  { %p831_p1 = scmp.lt.u32.totalorder %s827_s13, %s1203_s1 }
   0x8   :  { %p833_p2 = pnand %p831_p1, %p828_p0 }
   0xa   :  { %836 = shalt.err (!%p833_p2)
}
   0xb   :  { %s837_s18 = scalar_lea.vmem %s36_s10, 128  ;;  %p842_p4 = scmp.lt.s32.totalorder %s36_s10, %s36_s10 }
   0xc   :  { %p838_p3 = scmp.ne.s32.totalorder %s36_s10, %s837_s18  ;;  %p843_p5 = scmp.lt.s32.totalorder %s837_s18, %s837_s18 }
   0xe   :  { %p844_p6 = por %p843_p5, %p842_p4 }
  0x10   :  { %p845_p7 = pnand %p844_p6, %p838_p3 }
  0x12   :  { %848 = shalt.err (!%p845_p7)
}
  0x13   :  { %38 = dma.hbm_to_vmem [thread:$0]  %s1203_s1, 128, %s36_s10, [#allocation6]  }
  0x14   :  { %s992_s21 = smov [#allocation8]   ;;  %s993_s23 = smov [#allocation2]  }
  0x15   :  { %s56_s22 = sshll.u32 %s992_s21, 4  ;;  %s25_s24 = sshll.u32 %s993_s23, 4  ;;  %s57_s22 = int_to_ptr.vmem [resolvable:$true] %s56_s22  ;;  %s26_s24 = int_to_ptr.vmem [resolvable:$true] %s25_s24 }
  0x16   :  { %s849_s27 = scalar_lea.hbm %s1205_s3, 2048 }
  0x17   :  { %p850_p8 = scmp.ne.s32.totalorder %s1205_s3, %s849_s27  ;;  %p853_p9 = scmp.lt.u32.totalorder %s849_s27, %s1205_s3 }
  0x19   :  { %p855_p10 = pnand %p853_p9, %p850_p8 }
  0x1b   :  { %858 = shalt.err (!%p855_p10)
}
  0x1c   :  { %s859_s1 = scalar_lea.vmem %s57_s22, 2048  ;;  %p864_p12 = scmp.lt.s32.totalorder %s57_s22, %s57_s22 }
  0x1d   :  { %p860_p11 = scmp.ne.s32.totalorder %s57_s22, %s859_s1  ;;  %p865_p13 = scmp.lt.s32.totalorder %s859_s1, %s859_s1 }
  0x1f   :  { %p866_p0 = por %p865_p13, %p864_p12 }
  0x21   :  { %p867_p1 = pnand %p866_p0, %p860_p11 }
  0x23   :  { %870 = shalt.err (!%p867_p1)
}
  0x24   :  { %s994_s10 = smov 128   ;;  %s995_s12 = smov 8  }
  0x25   :  { %62 = dma.hbm_to_vmem [thread:$0]  %s1205_s3, 2048, %s57_s22, [#allocation9], %s994_s10, %s994_s10, %s995_s12  }
  0x26   :  { %s871_s17 = scalar_lea.hbm %s1202_s0, 128 }
  0x27   :  { %p872_p2 = scmp.ne.s32.totalorder %s1202_s0, %s871_s17  ;;  %p875_p3 = scmp.lt.u32.totalorder %s871_s17, %s1202_s0 }
  0x29   :  { %p877_p4 = pnand %p875_p3, %p872_p2 }
  0x2b   :  { %880 = shalt.err (!%p877_p4)
}
  0x2c   :  { %s881_s23 = scalar_lea.vmem %s26_s24, 128  ;;  %p886_p6 = scmp.lt.s32.totalorder %s26_s24, %s26_s24 }
  0x2d   :  { %p882_p5 = scmp.ne.s32.totalorder %s26_s24, %s881_s23  ;;  %p887_p7 = scmp.lt.s32.totalorder %s881_s23, %s881_s23 }
  0x2f   :  { %p888_p8 = por %p887_p7, %p886_p6 }
  0x31   :  { %p889_p9 = pnand %p888_p8, %p882_p5 }
  0x33   :  { %892 = shalt.err (!%p889_p9)
}
  0x34   :  { %28 = dma.hbm_to_vmem [thread:$0]  %s1202_s0, 128, %s26_s24, [#allocation3]  }
  0x35   :  { %s996_s25 = smov [#allocation7]   ;;  %s997_s27 = smov [#allocation10]  }
  0x36   :  { %s44_s26 = sshll.u32 %s996_s25, 4  ;;  %s70_s28 = sshll.u32 %s997_s27, 4  ;;  %s45_s26 = int_to_ptr.vmem [resolvable:$true] %s44_s26  ;;  %s71_s28 = int_to_ptr.vmem [resolvable:$true] %s70_s28 }
  0x37   :  { %s893_s11 = scalar_lea.hbm %s1204_s2, 2048 }
  0x38   :  { %p894_p10 = scmp.ne.s32.totalorder %s1204_s2, %s893_s11  ;;  %p897_p11 = scmp.lt.u32.totalorder %s893_s11, %s1204_s2 }
  0x3a   :  { %p899_p12 = pnand %p897_p11, %p894_p10 }
  0x3c   :  { %902 = shalt.err (!%p899_p12)
}
  0x3d   :  { %s903_s0 = scalar_lea.vmem %s45_s26, 2048  ;;  %p908_p0 = scmp.lt.s32.totalorder %s45_s26, %s45_s26 }
  0x3e   :  { %p904_p13 = scmp.ne.s32.totalorder %s45_s26, %s903_s0  ;;  %p909_p1 = scmp.lt.s32.totalorder %s903_s0, %s903_s0 }
  0x40   :  { %p910_p2 = por %p909_p1, %p908_p0 }
  0x42   :  { %p911_p3 = pnand %p910_p2, %p904_p13 }
  0x44   :  { %914 = shalt.err (!%p911_p3)
}
  0x45   :  { %50 = dma.hbm_to_vmem [thread:$0]  %s1204_s2, 2048, %s45_s26, [#allocation6], %s994_s10, %s994_s10, %s995_s12  }
  0x46   :  { %s915_s19 = scalar_lea.hbm %s1207_s5, 2048 }
  0x47   :  { %p916_p4 = scmp.ne.s32.totalorder %s1207_s5, %s915_s19  ;;  %p919_p5 = scmp.lt.u32.totalorder %s915_s19, %s1207_s5 }
  0x49   :  { %p921_p6 = pnand %p919_p5, %p916_p4 }
  0x4b   :  { %924 = shalt.err (!%p921_p6)
}
  0x4c   :  { %s925_s22 = scalar_lea.vmem %s71_s28, 2048  ;;  %p930_p8 = scmp.lt.s32.totalorder %s71_s28, %s71_s28 }
  0x4d   :  { %p926_p7 = scmp.ne.s32.totalorder %s71_s28, %s925_s22  ;;  %p931_p9 = scmp.lt.s32.totalorder %s925_s22, %s925_s22 }
  0x4f   :  { %p932_p10 = por %p931_p9, %p930_p8 }
  0x51   :  { %p933_p11 = pnand %p932_p10, %p926_p7 }
  0x53   :  { %936 = shalt.err (!%p933_p11)
}
  0x54   :  { %76 = dma.hbm_to_vmem [thread:$0]  %s1207_s5, 2048, %s71_s28, [#allocation9], %s994_s10, %s994_s10, %s995_s12  }
  0x55   :  { %s998_s26 = smov [#allocation11]   ;;  %s937_s11 = scalar_lea.hbm %s1209_s7, 2048 }
  0x56   :  { %s84_s27 = sshll.u32 %s998_s26, 4  ;;  %p938_p12 = scmp.ne.s32.totalorder %s1209_s7, %s937_s11  ;;  %s85_s27 = int_to_ptr.vmem [resolvable:$true] %s84_s27 }
  0x57   :  { %p941_p13 = scmp.lt.u32.totalorder %s937_s11, %s1209_s7 }
  0x59   :  { %p943_p0 = pnand %p941_p13, %p938_p12 }
  0x5b   :  { %946 = shalt.err (!%p943_p0)
}
  0x5c   :  { %s947_s0 = scalar_lea.vmem %s85_s27, 2048  ;;  %p952_p2 = scmp.lt.s32.totalorder %s85_s27, %s85_s27 }
  0x5d   :  { %p948_p1 = scmp.ne.s32.totalorder %s85_s27, %s947_s0  ;;  %p953_p3 = scmp.lt.s32.totalorder %s947_s0, %s947_s0 }
  0x5f   :  { %p954_p4 = por %p953_p3, %p952_p2 }
  0x61   :  { %p955_p5 = pnand %p954_p4, %p948_p1 }
  0x63   :  { %958 = shalt.err (!%p955_p5)
}
  0x64   :  { %90 = dma.hbm_to_vmem [thread:$0]  %s1209_s7, 2048, %s85_s27, [#allocation12], %s994_s10, %s994_s10, %s995_s12  }
  0x65   :  { %981 = dma.done.wait [#allocation3], 128  }
  0x66   :  { %982 = vsyncadd [#allocation3], 4294967168 }
  0x67   :  { %983 = dma.done.wait [#allocation6], 2176  }
  0x68   :  { %984 = vsyncadd [#allocation6], 4294965120 }
  0x69   :  { %985 = dma.done.wait [#allocation9], 4096  }
  0x6a   :  { %986 = vsyncadd [#allocation9], 4294963200 }
  0x6b   :  { %987 = dma.done.wait [#allocation12], 2048  }
  0x6c   :  { %988 = vsyncadd [#allocation12], 4294965248  ;;  %v999_v0 = vmov 0.0|0.0   ;;  %vm1000_vm0 = vmmov 0   ;;  %v1001_v1 = vmov 0.0   ;;  %v129_v2 = vld [vmem:[#allocation8] sm:$0xff] }
  0x6d   :  { %717 = vmatprep.subr.bf16.mxu0 %v999_v0  ;;  %741 = vmatprep.subr.bf16.mxu1 %v999_v0  ;;  %v130_v3 = vld [vmem:[#allocation8 + $0x8] sm:$0xff]  ;;  %v112_v4 = vld [vmem:[#allocation7] sm:$0xff]  ;;  %v131_v7 = vld [vmem:[#allocation8 + $0x10] sm:$0xff]  ;;  %s1002_s17 = smov [#allocation13]  }
  0x6e   :  { %609 = vmatprep.mubr.msk.f32.mxu0 %vm1000_vm0, %v1001_v1  ;;  %644 = vmatprep.mubr.msk.f32.mxu1 %vm1000_vm0, %v1001_v1  ;;  %v718_v5 = vpack.c.bf16 %v130_v3, %v129_v2  ;;  %v113_v6 = vld [vmem:[#allocation7 + $0x8] sm:$0xff]  ;;  %v132_v8 = vld [vmem:[#allocation8 + $0x18] sm:$0xff]  ;;  %v114_v10 = vld [vmem:[#allocation7 + $0x10] sm:$0xff]  ;;  %s493_s18 = sshll.u32 %s1002_s17, 4  ;;  %s494_s18 = int_to_ptr.vmem [resolvable:$true] %s493_s18 }
  0x6f   :  { %v742_v9 = vpack.c.bf16 %v113_v6, %v112_v4  ;;  %v115_v11 = vld [vmem:[#allocation7 + $0x18] sm:$0xff]  ;;  %v721_v12 = vpack.c.bf16 %v132_v8, %v131_v7  ;;  %v133_v14 = vld [vmem:[#allocation8 + $0x20] sm:$0xff]  ;;  %v134_v15 = vld [vmem:[#allocation8 + $0x28] sm:$0xff]  ;;  %p964_p7 = scmp.lt.s32.totalorder %s494_s18, %s494_s18 }
  0x70   :  { %719 = vmatpush3.bf16.msra.mxu0 %v718_v5  ;;  %v745_v13 = vpack.c.bf16 %v115_v11, %v114_v10  ;;  %v116_v16 = vld [vmem:[#allocation7 + $0x20] sm:$0xff]  ;;  %v117_v17 = vld [vmem:[#allocation7 + $0x28] sm:$0xff]  ;;  %v724_v18 = vpack.c.bf16 %v134_v15, %v133_v14  ;;  %v135_v20 = vld [vmem:[#allocation8 + $0x30] sm:$0xff] }
  0x71   :  { %743 = vmatpush3.bf16.msra.mxu1 %v742_v9  ;;  %720 = vmatprep.subr.bf16.mxu0 %v999_v0  ;;  %v748_v19 = vpack.c.bf16 %v117_v17, %v116_v16  ;;  %v136_v21 = vld [vmem:[#allocation8 + $0x38] sm:$0xff]  ;;  %v118_v22 = vld [vmem:[#allocation7 + $0x30] sm:$0xff]  ;;  %v137_v26 = vld [vmem:[#allocation8 + $0x40] sm:$0xff] }
  0x72   :  { %744 = vmatprep.subr.bf16.mxu1 %v999_v0  ;;  %v119_v23 = vld [vmem:[#allocation7 + $0x38] sm:$0xff]  ;;  %v727_v24 = vpack.c.bf16 %v136_v21, %v135_v20  ;;  %v138_v27 = vld [vmem:[#allocation8 + $0x48] sm:$0xff]  ;;  %v120_v28 = vld [vmem:[#allocation7 + $0x40] sm:$0xff] }
  0x73   :  { %v751_v25 = vpack.c.bf16 %v119_v23, %v118_v22  ;;  %v121_v29 = vld [vmem:[#allocation7 + $0x48] sm:$0xff]  ;;  %v730_v30 = vpack.c.bf16 %v138_v27, %v137_v26  ;;  %v139_v32 = vld [vmem:[#allocation8 + $0x50] sm:$0xff]  ;;  %v140_v33 = vld [vmem:[#allocation8 + $0x58] sm:$0xff] }
  0x74   :  { %722 = vmatpush3.bf16.msra.mxu0 %v721_v12  ;;  %v754_v31 = vpack.c.bf16 %v121_v29, %v120_v28  ;;  %v122_v34 = vld [vmem:[#allocation7 + $0x50] sm:$0xff]  ;;  %v123_v35 = vld [vmem:[#allocation7 + $0x58] sm:$0xff]  ;;  %v733_v36 = vpack.c.bf16 %v140_v33, %v139_v32  ;;  %v141_v38 = vld [vmem:[#allocation8 + $0x60] sm:$0xff] }
  0x75   :  { %746 = vmatpush3.bf16.msra.mxu1 %v745_v13  ;;  %723 = vmatprep.subr.bf16.mxu0 %v999_v0  ;;  %v757_v37 = vpack.c.bf16 %v123_v35, %v122_v34  ;;  %v142_v39 = vld [vmem:[#allocation8 + $0x68] sm:$0xff]  ;;  %v124_v40 = vld [vmem:[#allocation7 + $0x60] sm:$0xff]  ;;  %v143_v44 = vld [vmem:[#allocation8 + $0x70] sm:$0xff] }
  0x76   :  { %747 = vmatprep.subr.bf16.mxu1 %v999_v0  ;;  %v125_v41 = vld [vmem:[#allocation7 + $0x68] sm:$0xff]  ;;  %v736_v42 = vpack.c.bf16 %v142_v39, %v141_v38  ;;  %v144_v45 = vld [vmem:[#allocation8 + $0x78] sm:$0xff]  ;;  %v126_v46 = vld [vmem:[#allocation7 + $0x70] sm:$0xff] }
  0x77   :  { %v760_v43 = vpack.c.bf16 %v125_v41, %v124_v40  ;;  %v127_v47 = vld [vmem:[#allocation7 + $0x78] sm:$0xff]  ;;  %v739_v48 = vpack.c.bf16 %v144_v45, %v143_v44  ;;  %v294_v50 = vld [vmem:[#allocation10] sm:$0xff]  ;;  %v295_v51 = vld [vmem:[#allocation10 + $0x8] sm:$0xff] }
  0x78   :  { %725 = vmatpush3.bf16.msra.mxu0 %v724_v18  ;;  %v763_v49 = vpack.c.bf16 %v127_v47, %v126_v46  ;;  %v1157_v52 = vld [vmem:[#allocation5] sm:$0xff]  ;;  %v766_v53 = vpack.c.bf16 %v295_v51, %v294_v50  ;;  %v111_v54 = vld [vmem:[#allocation2] sm:$0xff]  ;;  %v298_v58 = vld [vmem:[#allocation10 + $0x20] sm:$0xff] }
  0x79   :  { %749 = vmatpush3.bf16.msra.mxu1 %v748_v19  ;;  %726 = vmatprep.subr.bf16.mxu0 %v999_v0  ;;  %v296_v55 = vld [vmem:[#allocation10 + $0x10] sm:$0xff]  ;;  %v297_v56 = vld [vmem:[#allocation10 + $0x18] sm:$0xff]  ;;  %v299_v59 = vld [vmem:[#allocation10 + $0x28] sm:$0xff] }
  0x7a   :  { %750 = vmatprep.subr.bf16.mxu1 %v999_v0  ;;  %v769_v57 = vpack.c.bf16 %v297_v56, %v296_v55  ;;  %v772_v60 = vpack.c.bf16 %v299_v59, %v298_v58  ;;  %v300_v61 = vld [vmem:[#allocation10 + $0x30] sm:$0xff]  ;;  %v301_v62 = vld [vmem:[#allocation10 + $0x38] sm:$0xff]  ;;  %v302_v2 = vld [vmem:[#allocation10 + $0x40] sm:$0xff] }
  0x7b   :  { %v775_v63 = vpack.c.bf16 %v301_v62, %v300_v61  ;;  %v303_v3 = vld [vmem:[#allocation10 + $0x48] sm:$0xff]  ;;  %v304_v5 = vld [vmem:[#allocation10 + $0x50] sm:$0xff]  ;;  %v305_v6 = vld [vmem:[#allocation10 + $0x58] sm:$0xff] }
  0x7c   :  { %728 = vmatpush3.bf16.msra.mxu0 %v727_v24  ;;  %v778_v4 = vpack.c.bf16 %v303_v3, %v302_v2  ;;  %v306_v7 = vld [vmem:[#allocation10 + $0x60] sm:$0xff]  ;;  %v307_v8 = vld [vmem:[#allocation10 + $0x68] sm:$0xff]  ;;  %v308_v10 = vld [vmem:[#allocation10 + $0x70] sm:$0xff] }
  0x7d   :  { %752 = vmatpush3.bf16.msra.mxu1 %v751_v25  ;;  %729 = vmatprep.subr.bf16.mxu0 %v999_v0  ;;  %v784_v9 = vpack.c.bf16 %v307_v8, %v306_v7  ;;  %v309_v11 = vld [vmem:[#allocation10 + $0x78] sm:$0xff]  ;;  %v388_v13 = vld [vmem:[#allocation11] sm:$0xff]  ;;  %v389_v14 = vld [vmem:[#allocation11 + $0x8] sm:$0xff] }
  0x7e   :  { %753 = vmatprep.subr.bf16.mxu1 %v999_v0  ;;  %v787_v12 = vpack.c.bf16 %v309_v11, %v308_v10  ;;  %v390_v15 = vld [vmem:[#allocation11 + $0x10] sm:$0xff]  ;;  %v790_v16 = vpack.c.bf16 %v389_v14, %v388_v13  ;;  %v391_v17 = vld [vmem:[#allocation11 + $0x18] sm:$0xff]  ;;  %v392_v19 = vld [vmem:[#allocation11 + $0x20] sm:$0xff] }
  0x7f   :  { %v793_v18 = vpack.c.bf16 %v391_v17, %v390_v15  ;;  %v393_v20 = vld [vmem:[#allocation11 + $0x28] sm:$0xff]  ;;  %v394_v22 = vld [vmem:[#allocation11 + $0x30] sm:$0xff]  ;;  %v395_v23 = vld [vmem:[#allocation11 + $0x38] sm:$0xff] }
  0x80   :  { %731 = vmatpush3.bf16.msra.mxu0 %v730_v30  ;;  %v796_v21 = vpack.c.bf16 %v393_v20, %v392_v19  ;;  %v799_v24 = vpack.c.bf16 %v395_v23, %v394_v22  ;;  %v396_v25 = vld [vmem:[#allocation11 + $0x40] sm:$0xff]  ;;  %v397_v26 = vld [vmem:[#allocation11 + $0x48] sm:$0xff]  ;;  %v398_v28 = vld [vmem:[#allocation11 + $0x50] sm:$0xff] }
  0x81   :  { %755 = vmatpush3.bf16.msra.mxu1 %v754_v31  ;;  %732 = vmatprep.subr.bf16.mxu0 %v999_v0  ;;  %v802_v27 = vpack.c.bf16 %v397_v26, %v396_v25  ;;  %v399_v29 = vld [vmem:[#allocation11 + $0x58] sm:$0xff]  ;;  %v400_v31 = vld [vmem:[#allocation11 + $0x60] sm:$0xff]  ;;  %v401_v32 = vld [vmem:[#allocation11 + $0x68] sm:$0xff] }
  0x82   :  { %756 = vmatprep.subr.bf16.mxu1 %v999_v0  ;;  %v805_v30 = vpack.c.bf16 %v399_v29, %v398_v28  ;;  %v808_v33 = vpack.c.bf16 %v401_v32, %v400_v31 }
  0x84   :  { %734 = vmatpush3.bf16.msra.mxu0 %v733_v36  ;;  %v505_v36 = vld [vmem:[%s1206_s4] ss:$0 sm:$0xff] }
  0x85   :  { %758 = vmatpush3.bf16.msra.mxu1 %v757_v37  ;;  %735 = vmatprep.subr.bf16.mxu0 %v999_v0 }
  0x86   :  { %759 = vmatprep.subr.bf16.mxu1 %v999_v0 }
  0x88   :  { %737 = vmatpush3.bf16.msra.mxu0 %v736_v42  ;;  %v402_v42 = vld [vmem:[#allocation11 + $0x70] sm:$0xff] }
  0x89   :  { %761 = vmatpush3.bf16.msra.mxu1 %v760_v43  ;;  %738 = vmatprep.subr.bf16.mxu0 %v999_v0  ;;  %v403_v43 = vld [vmem:[#allocation11 + $0x78] sm:$0xff] }
  0x8a   :  { %762 = vmatprep.subr.bf16.mxu1 %v999_v0  ;;  %v811_v44 = vpack.c.bf16 %v403_v43, %v402_v42 }
  0x8c   :  { %740 = vmatpush3.bf16.msra.mxu0 %v739_v48 }
  0x8d   :  { %764 = vmatpush3.bf16.msra.mxu1 %v763_v49  ;;  %765 = vmatprep.subr.bf16.mxu0 %v999_v0  ;;  %v507_v49 = vld [vmem:[%s1210_s8] ss:$0 sm:$0xff] }
  0x8e   :  { %789 = vmatprep.subr.bf16.mxu1 %v999_v0 }
  0x8f   :  { %610 = vmatmul.mubr.f32.vlgmr.msra.gmra.mrb[0].mxu0 %v1157_v52 }
  0x90   :  { %645 = vmatmul.mubr.f32.vlgmr.msra.gmra.mrb[0].mxu1 %v111_v54  ;;  %767 = vmatpush3.bf16.msra.mxu0 %v766_v53 }
  0x91   :  { %768 = vmatprep.subr.bf16.mxu0 %v999_v0  ;;  %679 = vmatprep.mubr.msk.f32.mxu0 %vm1000_vm0, %v1001_v1 }
  0x92   :  { %714 = vmatprep.mubr.msk.f32.mxu1 %vm1000_vm0, %v1001_v1  ;;  %v781_v1 = vpack.c.bf16 %v305_v6, %v304_v5  ;;  %791 = vmatpush3.bf16.msra.mxu1 %v790_v16 }
  0x93   :  { %792 = vmatprep.subr.bf16.mxu1 %v999_v0 }
  0x94   :  { %770 = vmatpush3.bf16.msra.mxu0 %v769_v57 }
  0x95   :  { %771 = vmatprep.subr.bf16.mxu0 %v999_v0 }
  0x96   :  { %794 = vmatpush3.bf16.msra.mxu1 %v793_v18 }
  0x97   :  { %795 = vmatprep.subr.bf16.mxu1 %v999_v0 }
  0x98   :  { %773 = vmatpush3.bf16.msra.mxu0 %v772_v60 }
  0x99   :  { %774 = vmatprep.subr.bf16.mxu0 %v999_v0 }
  0x9a   :  { %797 = vmatpush3.bf16.msra.mxu1 %v796_v21 }
  0x9b   :  { %798 = vmatprep.subr.bf16.mxu1 %v999_v0 }
  0x9c   :  { %776 = vmatpush3.bf16.msra.mxu0 %v775_v63 }
  0x9d   :  { %777 = vmatprep.subr.bf16.mxu0 %v999_v0 }
  0x9e   :  { %800 = vmatpush3.bf16.msra.mxu1 %v799_v24 }
  0x9f   :  { %801 = vmatprep.subr.bf16.mxu1 %v999_v0 }
  0xa0   :  { %779 = vmatpush3.bf16.msra.mxu0 %v778_v4 }
  0xa1   :  { %780 = vmatprep.subr.bf16.mxu0 %v999_v0 }
  0xa2   :  { %803 = vmatpush3.bf16.msra.mxu1 %v802_v27 }
  0xa3   :  { %804 = vmatprep.subr.bf16.mxu1 %v999_v0 }
  0xa4   :  { %782 = vmatpush3.bf16.msra.mxu0 %v781_v1 }
  0xa5   :  { %783 = vmatprep.subr.bf16.mxu0 %v999_v0 }
  0xa6   :  { %806 = vmatpush3.bf16.msra.mxu1 %v805_v30 }
  0xa7   :  { %807 = vmatprep.subr.bf16.mxu1 %v999_v0 }
  0xa8   :  { %785 = vmatpush3.bf16.msra.mxu0 %v784_v9 }
  0xa9   :  { %786 = vmatprep.subr.bf16.mxu0 %v999_v0 }
  0xaa   :  { %809 = vmatpush3.bf16.msra.mxu1 %v808_v33 }
  0xab   :  { %810 = vmatprep.subr.bf16.mxu1 %v999_v0  ;;  %v506_v0 = vld [vmem:[%s1208_s6] ss:$0 sm:$0xff]  ;;  %s959_s6 = scalar_lea.vmem %s494_s18, 128 }
  0xac   :  { %788 = vmatpush3.bf16.msra.mxu0 %v787_v12  ;;  %p960_p6 = scmp.ne.s32.totalorder %s494_s18, %s959_s6  ;;  %p965_p8 = scmp.lt.s32.totalorder %s959_s6, %s959_s6 }
  0xae   :  { %812 = vmatpush3.bf16.msra.mxu1 %v811_v44  ;;  %p966_p9 = por %p965_p8, %p964_p7 }
  0xb0   :  { %p967_p10 = pnand %p966_p9, %p960_p6 }
 0x162   :  { %v211_v34 = vpop.f32.mrb[0].mxu0 }
 0x163   :  { %v281_v35 = vpop.f32.mrb[0].mxu1  ;;  %v611_v37 = vpop.f32.mrb[1].mxu0 }
 0x164   :  { %v282_v38 = vadd.f32 %v281_v35, %v211_v34  ;;  %v646_v39 = vpop.f32.mrb[1].mxu1 }
 0x166   :  { %v292_v40 = vadd.f32 %v505_v36, %v282_v38 }
 0x168   :  { %v293_v41 = vmax.f32 %v292_v40, 0.0 }
 0x16a   :  { %680 = vmatmul.mubr.f32.vlgmr.msra.gmra.mrb[2].mxu0 %v293_v41 }
 0x23d   :  { %v383_v45 = vpop.f32.mrb[2].mxu0 }
 0x23e   :  { %v384_v46 = vadd.f32 %v506_v0, %v383_v45  ;;  %v681_v47 = vpop.f32.mrb[3].mxu0 }
 0x240   :  { %v387_v48 = vmax.f32 %v384_v46, 0.0 }
 0x242   :  { %715 = vmatmul.mubr.f32.vlgmr.msra.gmra.mrb[2].mxu1 %v387_v48 }
 0x315   :  { %v477_v50 = vpop.f32.mrb[2].mxu1 }
 0x316   :  { %v478_v51 = vadd.f32 %v507_v49, %v477_v50  ;;  %v716_v53 = vpop.f32.mrb[3].mxu1 }
 0x318   :  { %825 = vtanh.f32 %v478_v51 }
 0x322   :  { %v826_v54 = vpop.eup %825 }
 0x323   :  { %v482_v55 = vmul.f32 0.05, %v826_v54 }
 0x325   :  { %v483_v56 = vadd.f32 %v482_v55, %v1157_v52 }
 0x327   :  { %v508_v57 = vclamps-f32 %v483_v56, 1.0 }
 0x329   :  { %486 = vst [vmem:[#allocation13] sm:$0xff] %v508_v57 }
 0x32a   :  { %970 = shalt.err (!%p967_p10)
}
 0x32b   :  { %s971_s20 = scalar_lea.hbm %s1211_s9, 128 }
 0x32c   :  { %p972_p11 = scmp.ne.s32.totalorder %s1211_s9, %s971_s20  ;;  %p975_p12 = scmp.lt.u32.totalorder %s971_s20, %s1211_s9 }
 0x32e   :  { %p977_p13 = pnand %p975_p12, %p972_p11 }
 0x330   :  { %980 = shalt.err (!%p977_p13)
}
 0x331   :  { %496 = dma.vmem_to_hbm [thread:$0]  %s494_s18, 128, %s1211_s9, [#allocation4]  }
 0x332   :  { %989 = dma.done.wait [#allocation4], 128  }
 0x333   :  { %990 = vsyncadd [#allocation4], 4294967168 }
 0x334   :  { %500 = vsyncpa [#allocation3], 1 }
 0x335   :  { %501 = vsyncpa [#allocation6], 1 }
 0x336   :  { %502 = vsyncpa [#allocation9], 1 }
 0x337   :  { %503 = vsyncpa [#allocation12], 1 }
 0x338   :  { %504 = vsyncpa [#allocation4], 1 }

</bundles_post_ra>
